<compile_context>
chip_gen: v7x
topology: tpu7x:2x2x1
jax: 0.10.0
libtpu: 0.0.40
codegen_flags: <defaults>
</compile_context>

<pallas_src>
import jax
import jax.numpy as jnp
from jax.experimental import pallas as pl
from jax.experimental.pallas import tpu as pltpu


def mlp_kernel(x_ref, w1_ref, b1_ref, w2_ref, b2_ref, w3_ref, b3_ref, o_ref):
    x = x_ref[...].astype(jnp.float32)                                  # (TB, D_in)
    h = jnp.dot(x, w1_ref[...], preferred_element_type=jnp.float32) + b1_ref[...]
    h = jnp.tanh(h)                                                     # (TB, H)
    h = jnp.dot(h, w2_ref[...], preferred_element_type=jnp.float32) + b2_ref[...]
    h = jnp.tanh(h)                                                     # (TB, H)
    y = jnp.dot(h, w3_ref[...], preferred_element_type=jnp.float32) + b3_ref[...]
    o_ref[...] = y.astype(o_ref.dtype)                                  # (TB, D_out)


def mlp_forward(x, w1, b1, w2, b2, w3, b3, *, block_b=512):
    """x: (B, D_in); w1: (D_in, H); w2: (H, H); w3: (H, D_out); biases 1-D.
    Weights are already laid out (in, out) so the kernel computes x @ W directly.
    Returns (B, D_out) float32."""
    B, d_in = x.shape
    h_dim = w1.shape[1]
    d_out = w3.shape[1]

    # Batch tile: whole batch when small, else a sublane-aligned block.
    tb = B if B <= block_b else block_b
    b_pad = pl.cdiv(B, tb) * tb
    x32 = x.astype(jnp.float32)
    if b_pad != B:
        x32 = jnp.pad(x32, ((0, b_pad - B), (0, 0)))

    b1r = b1.reshape(1, h_dim).astype(jnp.float32)
    b2r = b2.reshape(1, h_dim).astype(jnp.float32)
    b3r = b3.reshape(1, d_out).astype(jnp.float32)

    out = pl.pallas_call(
        mlp_kernel,
        out_shape=jax.ShapeDtypeStruct((b_pad, d_out), jnp.float32),
        grid_spec=pltpu.PrefetchScalarGridSpec(
            num_scalar_prefetch=0,
            grid=(b_pad // tb,),
            in_specs=[
                pl.BlockSpec((tb, d_in), lambda i: (i, 0)),     # x tile (streamed)
                pl.BlockSpec((d_in, h_dim), lambda i: (0, 0)),  # W1 (resident)
                pl.BlockSpec((1, h_dim), lambda i: (0, 0)),     # b1
                pl.BlockSpec((h_dim, h_dim), lambda i: (0, 0)), # W2
                pl.BlockSpec((1, h_dim), lambda i: (0, 0)),     # b2
                pl.BlockSpec((h_dim, d_out), lambda i: (0, 0)), # W3
                pl.BlockSpec((1, d_out), lambda i: (0, 0)),     # b3
            ],
            out_specs=pl.BlockSpec((tb, d_out), lambda i: (i, 0)),
        ),
        compiler_params=pltpu.CompilerParams(
            dimension_semantics=("parallel",),
        ),
    )(x32, w1.astype(jnp.float32), b1r,
      w2.astype(jnp.float32), b2r,
      w3.astype(jnp.float32), b3r)
    return out[:B]


def _orthogonal(key, rows, cols):
    """(Semi-)orthogonal matrix of shape (rows, cols), like torch.nn.init.orthogonal_."""
    if rows >= cols:
        g = jax.random.normal(key, (rows, cols), dtype=jnp.float32)
        q, r = jnp.linalg.qr(g)
        return q * jnp.sign(jnp.diag(r))[None, :]
    g = jax.random.normal(key, (cols, rows), dtype=jnp.float32)
    q, r = jnp.linalg.qr(g)
    q = q * jnp.sign(jnp.diag(r))[None, :]
    return q.T


def init_params(key, input_dim, hidden_dim, output_dim, bias_bool=True):
    """Mirror MLP.__init__: orthogonal weights, PyTorch-default uniform biases.
    Weights are returned pre-transposed to (in, out) for the kernel."""
    ks = jax.random.split(key, 6)
    # torch Linear weight is (out, in); build that orientation, then transpose.
    w1 = _orthogonal(ks[0], hidden_dim, input_dim).T      # (in, hidden)
    w2 = _orthogonal(ks[1], hidden_dim, hidden_dim).T     # (hidden, hidden)
    w3 = _orthogonal(ks[2], output_dim, hidden_dim).T     # (hidden, out)

    def bias(k, fan_in, n):
        bound = 1.0 / jnp.sqrt(jnp.float32(fan_in))
        return jax.random.uniform(k, (n,), minval=-bound, maxval=bound,
                                  dtype=jnp.float32)

    b1 = bias(ks[3], input_dim, hidden_dim)
    b2 = bias(ks[4], hidden_dim, hidden_dim)
    b3 = (bias(ks[5], hidden_dim, output_dim) if bias_bool
          else jnp.zeros((output_dim,), jnp.float32))
    return w1, b1, w2, b2, w3, b3


if __name__ == "__main__":
    key = jax.random.PRNGKey(0)
    kx, kp = jax.random.split(key)

    B, D_IN, HIDDEN, D_OUT = 8, 6, 32, 2
    x = jax.random.normal(kx, (B, D_IN), dtype=jnp.float32)
    params = init_params(kp, D_IN, HIDDEN, D_OUT)

    out = mlp_forward(x, *params)
    jax.block_until_ready(out)

    # pure-JAX reference (full-precision matmuls)
    w1, b1, w2, b2, w3, b3 = params
    hi = jnp.tanh(jnp.dot(x, w1, precision=jax.lax.Precision.HIGHEST) + b1)
    hi = jnp.tanh(jnp.dot(hi, w2, precision=jax.lax.Precision.HIGHEST) + b2)
    ref = jnp.dot(hi, w3, precision=jax.lax.Precision.HIGHEST) + b3

    assert out.shape == (B, D_OUT)
    assert jnp.allclose(out, ref, rtol=1e-4, atol=1e-4), (out, ref)

    print("KERNEL_OK")
</pallas_src>

<mosaic_0001>
module attributes {stable_mosaic.version = 11 : i64} {
  func.func @mlp_kernel(%arg0: i32, %arg1: memref<8x6xf32, #tpu.memory_space<vmem>>, %arg2: memref<6x32xf32, #tpu.memory_space<vmem>>, %arg3: memref<1x32xf32, #tpu.memory_space<vmem>>, %arg4: memref<32x32xf32, #tpu.memory_space<vmem>>, %arg5: memref<1x32xf32, #tpu.memory_space<vmem>>, %arg6: memref<32x2xf32, #tpu.memory_space<vmem>>, %arg7: memref<1x2xf32, #tpu.memory_space<vmem>>, %arg8: memref<8x2xf32, #tpu.memory_space<vmem>>) attributes {dimension_semantics = [#tpu.dimension_semantics<parallel>], iteration_bounds = array<i64: 1>, scalar_prefetch = 0 : i64, scratch_operands = 0 : i64, tpu.core_type = #tpu.core_type<tc>, window_params = [{transform_indices = @transform_0, window_bounds = array<i64: 8, 6>}, {pipeline_mode = #tpu.pipeline_mode<synchronous>, transform_indices = @transform_1, window_bounds = array<i64: 6, 32>}, {pipeline_mode = #tpu.pipeline_mode<synchronous>, transform_indices = @transform_2, window_bounds = array<i64: 1, 32>}, {pipeline_mode = #tpu.pipeline_mode<synchronous>, transform_indices = @transform_3, window_bounds = array<i64: 32, 32>}, {pipeline_mode = #tpu.pipeline_mode<synchronous>, transform_indices = @transform_4, window_bounds = array<i64: 1, 32>}, {pipeline_mode = #tpu.pipeline_mode<synchronous>, transform_indices = @transform_5, window_bounds = array<i64: 32, 2>}, {pipeline_mode = #tpu.pipeline_mode<synchronous>, transform_indices = @transform_6, window_bounds = array<i64: 1, 2>}, {transform_indices = @transform_7, window_bounds = array<i64: 8, 2>}]} {
    %c0 = arith.constant 0 : index
    %c0_0 = arith.constant 0 : index
    %0 = vector.load %arg1[%c0, %c0_0] : memref<8x6xf32, #tpu.memory_space<vmem>>, vector<8x6xf32>
    %c0_1 = arith.constant 0 : index
    %c0_2 = arith.constant 0 : index
    %1 = vector.load %arg2[%c0_1, %c0_2] : memref<6x32xf32, #tpu.memory_space<vmem>>, vector<6x32xf32>
    %cst = arith.constant dense<0.000000e+00> : vector<8x32xf32>
    %2 = tpu.matmul %0, %1, %cst {dimension_numbers = #tpu.dot_dimension_numbers<[1], [0], [0], [1], [0, 0, 1, 1], [], []>} : vector<8x6xf32>, vector<6x32xf32>, vector<8x32xf32> -> vector<8x32xf32>
    %c0_3 = arith.constant 0 : index
    %c0_4 = arith.constant 0 : index
    %3 = vector.load %arg3[%c0_3, %c0_4] : memref<1x32xf32, #tpu.memory_space<vmem>>, vector<1x32xf32>
    %4 = vector.broadcast %3 : vector<1x32xf32> to vector<8x32xf32>
    %5 = arith.addf %2, %4 : vector<8x32xf32>
    %6 = math.tanh %5 : vector<8x32xf32>
    %c0_5 = arith.constant 0 : index
    %c0_6 = arith.constant 0 : index
    %7 = vector.load %arg4[%c0_5, %c0_6] : memref<32x32xf32, #tpu.memory_space<vmem>>, vector<32x32xf32>
    %cst_7 = arith.constant dense<0.000000e+00> : vector<8x32xf32>
    %8 = tpu.matmul %6, %7, %cst_7 {dimension_numbers = #tpu.dot_dimension_numbers<[1], [0], [0], [1], [0, 0, 1, 1], [], []>} : vector<8x32xf32>, vector<32x32xf32>, vector<8x32xf32> -> vector<8x32xf32>
    %c0_8 = arith.constant 0 : index
    %c0_9 = arith.constant 0 : index
    %9 = vector.load %arg5[%c0_8, %c0_9] : memref<1x32xf32, #tpu.memory_space<vmem>>, vector<1x32xf32>
    %10 = vector.broadcast %9 : vector<1x32xf32> to vector<8x32xf32>
    %11 = arith.addf %8, %10 : vector<8x32xf32>
    %12 = math.tanh %11 : vector<8x32xf32>
    %c0_10 = arith.constant 0 : index
    %c0_11 = arith.constant 0 : index
    %13 = vector.load %arg6[%c0_10, %c0_11] : memref<32x2xf32, #tpu.memory_space<vmem>>, vector<32x2xf32>
    %cst_12 = arith.constant dense<0.000000e+00> : vector<8x2xf32>
    %14 = tpu.matmul %12, %13, %cst_12 {dimension_numbers = #tpu.dot_dimension_numbers<[1], [0], [0], [1], [0, 0, 1, 1], [], []>} : vector<8x32xf32>, vector<32x2xf32>, vector<8x2xf32> -> vector<8x2xf32>
    %c0_13 = arith.constant 0 : index
    %c0_14 = arith.constant 0 : index
    %15 = vector.load %arg7[%c0_13, %c0_14] : memref<1x2xf32, #tpu.memory_space<vmem>>, vector<1x2xf32>
    %16 = vector.broadcast %15 : vector<1x2xf32> to vector<8x2xf32>
    %17 = arith.addf %14, %16 : vector<8x2xf32>
    %c0_15 = arith.constant 0 : index
    %c0_16 = arith.constant 0 : index
    %18 = vector.load %arg8[%c0_15, %c0_16] : memref<8x2xf32, #tpu.memory_space<vmem>>, vector<8x2xf32>
    tpu.vector_store %arg8[%c0_15, %c0_16], %17 {strides = array<i32>} : memref<8x2xf32, #tpu.memory_space<vmem>>, vector<8x2xf32>,
    return
  }
  func.func @transform_0(%arg0: i32) -> (i32, i32) {
    %c0_i32 = arith.constant 0 : i32
    %c0_i32_0 = arith.constant 0 : i32
    return %arg0, %c0_i32 : i32, i32
  }
  func.func @transform_1(%arg0: i32) -> (i32, i32) {
    %c0_i32 = arith.constant 0 : i32
    %c0_i32_0 = arith.constant 0 : i32
    %c0_i32_1 = arith.constant 0 : i32
    return %c0_i32, %c0_i32_0 : i32, i32
  }
  func.func @transform_2(%arg0: i32) -> (i32, i32) {
    %c0_i32 = arith.constant 0 : i32
    %c0_i32_0 = arith.constant 0 : i32
    %c0_i32_1 = arith.constant 0 : i32
    return %c0_i32, %c0_i32_0 : i32, i32
  }
  func.func @transform_3(%arg0: i32) -> (i32, i32) {
    %c0_i32 = arith.constant 0 : i32
    %c0_i32_0 = arith.constant 0 : i32
    %c0_i32_1 = arith.constant 0 : i32
    return %c0_i32, %c0_i32_0 : i32, i32
  }
  func.func @transform_4(%arg0: i32) -> (i32, i32) {
    %c0_i32 = arith.constant 0 : i32
    %c0_i32_0 = arith.constant 0 : i32
    %c0_i32_1 = arith.constant 0 : i32
    return %c0_i32, %c0_i32_0 : i32, i32
  }
  func.func @transform_5(%arg0: i32) -> (i32, i32) {
    %c0_i32 = arith.constant 0 : i32
    %c0_i32_0 = arith.constant 0 : i32
    %c0_i32_1 = arith.constant 0 : i32
    return %c0_i32, %c0_i32_0 : i32, i32
  }
  func.func @transform_6(%arg0: i32) -> (i32, i32) {
    %c0_i32 = arith.constant 0 : i32
    %c0_i32_0 = arith.constant 0 : i32
    %c0_i32_1 = arith.constant 0 : i32
    return %c0_i32, %c0_i32_0 : i32, i32
  }
  func.func @transform_7(%arg0: i32) -> (i32, i32) {
    %c0_i32 = arith.constant 0 : i32
    %c0_i32_0 = arith.constant 0 : i32
    return %arg0, %c0_i32 : i32, i32
  }
}

</mosaic_0001>

<bundles_post_ra>
// kernel: tpu_custom_call.1
= control target key start
LH: loop header
LB: loop body
LE: loop exit
PB: predicated region body
PF: predicated region fallthrough
CT: control target
= control target key end

     0   :  { %12 = vsyncpa [#allocation3], 0  ;;  %s393_s24 = smov [#allocation2]   ;;  %s490_s0 = inlined_call_operand.vmem [shape: f32[8,6], index: 0, kind: input, shape index: {}]   ;;  %s491_s1 = inlined_call_operand.hbm [shape: f32[6,32], index: 1, kind: input, shape index: {}]   ;;  %s492_s2 = inlined_call_operand.vmem [shape: f32[1,32], index: 2, kind: input, shape index: {}]   ;;  %s493_s3 = inlined_call_operand.vmem [shape: f32[32,32], index: 3, kind: input, shape index: {}]   ;;  %s494_s4 = inlined_call_operand.vmem [shape: f32[1,32], index: 4, kind: input, shape index: {}]   ;;  %s495_s5 = inlined_call_operand.vmem [shape: f32[32,2], index: 5, kind: input, shape index: {}]   ;;  %s496_s6 = inlined_call_operand.vmem [shape: f32[1,2], index: 6, kind: input, shape index: {}]   ;;  %s497_s7 = inlined_call_operand.vmem [shape: f32[8,2], index: 7, kind: output, shape index: {}]  }
   0x1   :  { %s21_s25 = sshll.u32 %s393_s24, 4  ;;  %s369_s28 = scalar_lea.hbm %s491_s1, 128  ;;  %s22_s25 = int_to_ptr.vmem [resolvable:$true] %s21_s25 }
   0x2   :  { %p370_p0 = scmp.ne.s32.totalorder %s491_s1, %s369_s28  ;;  %p373_p1 = scmp.lt.u32.totalorder %s369_s28, %s491_s1 }
   0x4   :  { %p375_p2 = pnand %p373_p1, %p370_p0 }
   0x6   :  { %378 = shalt.err (!%p375_p2)
}
   0x7   :  { %s379_s10 = scalar_lea.vmem %s22_s25, 128  ;;  %p384_p4 = scmp.lt.s32.totalorder %s22_s25, %s22_s25 }
   0x8   :  { %p380_p3 = scmp.ne.s32.totalorder %s22_s25, %s379_s10  ;;  %p385_p5 = scmp.lt.s32.totalorder %s379_s10, %s379_s10 }
   0xa   :  { %p386_p6 = por %p385_p5, %p384_p4 }
   0xc   :  { %p387_p7 = pnand %p386_p6, %p380_p3 }
   0xe   :  { %390 = shalt.err (!%p387_p7)
}
   0xf   :  { %24 = dma.hbm_to_vmem [thread:$0]  %s491_s1, 128, %s22_s25, [#allocation3]  }
  0x10   :  { %391 = dma.done.wait [#allocation3], 128  }
  0x11   :  { %392 = vsyncadd [#allocation3], 4294967168  ;;  %v394_v0 = vmov 0.0   ;;  %vm395_vm0 = vmmov 0   ;;  %vm51_vm1 = vcmask 1045504   ;;  %vm47_vm2 = vcmask 48128  }
  0x12   :  { %322 = vmatprep.subr.mxu0 %v394_v0  ;;  %324 = vmatprep.mubr.msk.f32.mxu0 %vm395_vm0, %v394_v0  ;;  %v39_v1 = vld [vmem:[#allocation2] sm:$0x3f]  ;;  %v127_v4 = vld [vmem:[%s493_s3 + $0x8] sm:$0xff]  ;;  %v128_v5 = vld [vmem:[%s493_s3 + $0x10] sm:$0xff]  ;;  %v396_v6 = vmov 0.0|0.0   ;;  %vm137_vm3 = vcmask 261120  }
  0x13   :  { %335 = vmatprep.mubr.msk.f32.mxu1 %vm395_vm0, %v394_v0  ;;  %v38_v2 = vld [vmem:[%s490_s0] sm:$0xff]  ;;  %323 = vmatpush3.msk.msra.mxu0 %vm51_vm1, %v39_v1  ;;  %v129_v8 = vld [vmem:[%s493_s3 + $0x18] sm:$0xff]  ;;  %v213_v16 = vld [vmem:[%s495_s5 + $0x8] sm:$0xff]  ;;  %vm296_vm4 = vcmask 15360  }
  0x14   :  { %325 = vmatmul.mubr.msk.f32.vlgmr.msra.gmra.mrb[0].mxu0 %vm47_vm2, %v38_v2  ;;  %v126_v3 = vld [vmem:[%s493_s3] sm:$0xff]  ;;  %349 = vmatprep.subr.bf16.mxu1 %v396_v6  ;;  %v353_v9 = vpack.c.bf16 %v129_v8, %v128_v5  ;;  %v214_v17 = vld [vmem:[%s495_s5 + $0x10] sm:$0xff]  ;;  %v215_v19 = vld [vmem:[%s495_s5 + $0x18] sm:$0xff] }
  0x15   :  { %346 = vmatprep.mubr.msk.f32.mxu0 %vm395_vm0, %v394_v0  ;;  %v350_v7 = vpack.c.bf16 %v127_v4, %v126_v3  ;;  %355 = vmatprep.subr.bf16.mxu0 %v396_v6  ;;  %v303_v10 = vld [vmem:[%s492_s2] ss:$0 sm:$0xff]  ;;  %v359_v20 = vpack.c.bf16 %v215_v19, %v214_v17 }
  0x16   :  { %v212_v15 = vld [vmem:[%s495_s5] sm:$0xff] }
  0x17   :  { %351 = vmatpush3.bf16.msra.mxu1 %v350_v7  ;;  %v356_v18 = vpack.c.bf16 %v213_v16, %v212_v15  ;;  %v306_v21 = vld [vmem:[%s494_s4] ss:$0 sm:$0xff] }
  0x18   :  { %352 = vmatprep.subr.bf16.mxu1 %v396_v6  ;;  %v308_v26 = vld [vmem:[%s496_s6] ss:$0 sm:$0xff] }
  0x19   :  { %357 = vmatpush3.bf16.msra.mxu0 %v356_v18 }
  0x1a   :  { %358 = vmatprep.subr.bf16.mxu0 %v396_v6 }
  0x1b   :  { %354 = vmatpush3.bf16.msra.mxu1 %v353_v9 }
  0x1d   :  { %360 = vmatpush3.bf16.msra.mxu0 %v359_v20 }
  0xe7   :  { %v121_v11 = vpop.f32.mrb[0].mxu0 }
  0xe8   :  { %v122_v12 = vadd.f32 %v303_v10, %v121_v11  ;;  %v326_v13 = vpop.f32.mrb[1].mxu0 }
  0xea   :  { %365 = vtanh.f32 %v122_v12 }
  0xf4   :  { %v366_v14 = vpop.eup %365 }
  0xf5   :  { %336 = vmatmul.mubr.msk.f32.vlgmr.msra.gmra.mrb[0].mxu1 %vm137_vm3, %v366_v14 }
 0x1c8   :  { %v207_v22 = vpop.f32.mrb[0].mxu1 }
 0x1c9   :  { %v208_v23 = vadd.f32 %v306_v21, %v207_v22  ;;  %v337_v24 = vpop.f32.mrb[1].mxu1 }
 0x1cb   :  { %367 = vtanh.f32 %v208_v23 }
 0x1d5   :  { %v368_v25 = vpop.eup %367 }
 0x1d6   :  { %347 = vmatmul.mubr.msk.f32.vlgmr.msra.gmra.mrb[2].mxu0 %vm137_vm3, %v368_v25 }
 0x2a9   :  { %v292_v27 = vpop.f32.mrb[2].mxu0 }
 0x2aa   :  { %v293_v28 = vadd.f32 %v308_v26, %v292_v27  ;;  %v348_v29 = vpop.f32.mrb[3].mxu0 }
 0x2ac   :  { %297 = vst.msk [vmem:[%s497_s7] sm:$0xff] %vm296_vm4, %v293_v28 }
 0x2ad   :  { %302 = vsyncpa [#allocation3], 1 }

</bundles_post_ra>
